<compile_context>
chip_gen: v6e
topology: v6e:2x2x1
jax: 0.10.0
libtpu: 0.0.40
codegen_flags: <defaults>
</compile_context>

<pallas_src>
import functools

import jax
import jax.numpy as jnp
from jax.experimental import pallas as pl
from jax.experimental.pallas import tpu as pltpu

_LANES = 128
_SUBLANES = 8


def _exp_loss_kernel(data_ref, target_ref, partial_ref, *, scale):
    # Upcast inside the kernel (free VPU cast; avoids wrapper-side f32 copies).
    d = data_ref[...].astype(jnp.float32)
    t = target_ref[...].astype(jnp.float32)
    # Hot path: elementwise |d - t| * scale -> exp -> block-local sum.
    # Each grid step owns its own output slot, so there is no cross-step
    # accumulator dependency and the grid axis can be "parallel".
    partial_ref[0, 0] = jnp.sum(jnp.exp(jnp.abs(d - t) * scale))


def exp_loss(data: jax.Array, target: jax.Array, scale: float,
             *, max_tile_rows: int = 2048) -> jax.Array:
    """Pallas implementation of ExpLoss.forward semantics (the computed loss)."""
    assert data.shape == target.shape, (data.shape, target.shape)
    total_n = data.size
    scale = float(scale)

    # Flatten to a lane-dense (rows, 128) slab.  Zero padding contributes
    # exactly exp(|0-0|*scale) = 1.0 per padded element; subtracted below.
    d = data.reshape(-1)
    t = target.reshape(-1)
    n = d.shape[0]

    chunk = _SUBLANES * _LANES
    flat_pad = (-n) % chunk
    if flat_pad:
        d = jnp.pad(d, (0, flat_pad))
        t = jnp.pad(t, (0, flat_pad))
    n_rows = (n + flat_pad) // _LANES  # multiple of 8

    # Choose the number of blocks / rows-per-block so padding waste stays tiny
    # and each input tile is at most ~1 MiB (f32) -> fits all generations.
    num_blocks = -(-n_rows // max_tile_rows)
    tile_rows = -(-n_rows // num_blocks)
    tile_rows = -(-tile_rows // _SUBLANES) * _SUBLANES
    padded_rows = num_blocks * tile_rows
    row_pad = padded_rows - n_rows

    d2 = d.reshape(n_rows, _LANES)
    t2 = t.reshape(n_rows, _LANES)
    if row_pad:
        d2 = jnp.pad(d2, ((0, row_pad), (0, 0)))
        t2 = jnp.pad(t2, ((0, row_pad), (0, 0)))

    n_pad_total = flat_pad + row_pad * _LANES

    kernel = functools.partial(_exp_loss_kernel, scale=scale)

    partials = pl.pallas_call(
        kernel,
        out_shape=jax.ShapeDtypeStruct((num_blocks, 1), jnp.float32),
        grid_spec=pltpu.PrefetchScalarGridSpec(
            num_scalar_prefetch=0,
            grid=(num_blocks,),
            in_specs=[
                pl.BlockSpec((tile_rows, _LANES), lambda i: (i, 0)),
                pl.BlockSpec((tile_rows, _LANES), lambda i: (i, 0)),
            ],
            out_specs=pl.BlockSpec(
                (1, 1), lambda i: (i, 0), memory_space=pltpu.SMEM
            ),
        ),
        compiler_params=pltpu.CompilerParams(
            # Independent partial sums -> parallel grid (both TCs on v7x).
            dimension_semantics=("parallel",),
        ),
    )(d2, t2)

    total = jnp.sum(partials)
    if n_pad_total:
        # Every padded element contributed exactly exp(0) = 1.0.
        total = total - jnp.float32(n_pad_total)
    # NOTE: exp(|diff|*scale) can overflow to +inf for large diffs/scale; this
    # matches the PyTorch reference semantics.
    return total / jnp.float32(total_n)


if __name__ == "__main__":
    # Deterministic "config": config.scale
    SCALE = 0.5

    key = jax.random.PRNGKey(0)
    k1, k2, k3, k4 = jax.random.split(key, 4)

    # Test 1: small regression-style predictions (batch=2, 4x16 values), f32.
    data = jax.random.normal(k1, (2, 4, 16), dtype=jnp.float32)
    target = jax.random.normal(k2, (2, 4, 16), dtype=jnp.float32)
    loss = jax.block_until_ready(exp_loss(data, target, SCALE))
    ref = jnp.mean(jnp.exp(jnp.abs(data - target) * SCALE))
    assert jnp.allclose(loss, ref, rtol=1e-5, atol=1e-5), (loss, ref)

    # Test 2: force the multi-block parallel-grid path (+ row padding) with a
    # tiny max_tile_rows so it stays small while exercising the real structure.
    data2 = jax.random.normal(k3, (40, 128), dtype=jnp.float32)
    target2 = jax.random.normal(k4, (40, 128), dtype=jnp.float32)
    loss2 = jax.block_until_ready(exp_loss(data2, target2, SCALE, max_tile_rows=16))
    ref2 = jnp.mean(jnp.exp(jnp.abs(data2 - target2) * SCALE))
    assert jnp.allclose(loss2, ref2, rtol=1e-5, atol=1e-5), (loss2, ref2)

    # Test 3: bf16 inputs stream as-is; upcast happens inside the kernel.
    data3 = data.astype(jnp.bfloat16)
    target3 = target.astype(jnp.bfloat16)
    loss3 = jax.block_until_ready(exp_loss(data3, target3, SCALE))
    ref3 = jnp.mean(jnp.exp(jnp.abs(data3.astype(jnp.float32)
                                    - target3.astype(jnp.float32)) * SCALE))
    assert jnp.allclose(loss3, ref3, rtol=1e-3, atol=1e-3), (loss3, ref3)

    print("KERNEL_OK")
</pallas_src>

<mosaic_0001>
module attributes {stable_mosaic.version = 11 : i64} {
  func.func @_exp_loss_kernel(%arg0: i32, %arg1: memref<8x128xf32, #tpu.memory_space<vmem>>, %arg2: memref<8x128xf32, #tpu.memory_space<vmem>>, %arg3: memref<1x1xf32, #tpu.memory_space<smem>>) attributes {dimension_semantics = [#tpu.dimension_semantics<parallel>], iteration_bounds = array<i64: 1>, scalar_prefetch = 0 : i64, scratch_operands = 0 : i64, tpu.core_type = #tpu.core_type<tc>, window_params = [{transform_indices = @transform_0, window_bounds = array<i64: 8, 128>}, {transform_indices = @transform_1, window_bounds = array<i64: 8, 128>}, {transform_indices = @transform_2, window_bounds = array<i64: 1, 1>}]} {
    %c0 = arith.constant 0 : index
    %c0_0 = arith.constant 0 : index
    %0 = vector.load %arg1[%c0, %c0_0] : memref<8x128xf32, #tpu.memory_space<vmem>>, vector<8x128xf32>
    %c0_1 = arith.constant 0 : index
    %c0_2 = arith.constant 0 : index
    %1 = vector.load %arg2[%c0_1, %c0_2] : memref<8x128xf32, #tpu.memory_space<vmem>>, vector<8x128xf32>
    %2 = arith.subf %0, %1 : vector<8x128xf32>
    %3 = math.absf %2 : vector<8x128xf32>
    %cst = arith.constant 5.000000e-01 : f32
    %4 = vector.broadcast %cst : f32 to vector<8x128xf32>
    %5 = arith.mulf %3, %4 : vector<8x128xf32>
    %6 = math.exp %5 : vector<8x128xf32>
    %7 = vector.shape_cast %6 : vector<8x128xf32> to vector<1x8x128xf32>
    %cst_3 = arith.constant dense<0.000000e+00> : vector<1xf32>
    %8 = vector.multi_reduction <add>, %7, %cst_3 [1, 2] : vector<1x8x128xf32> to vector<1xf32>
    %9 = vector.shape_cast %8 : vector<1xf32> to vector<1x1x1xf32>
    %10 = vector.extract %9[0, 0, 0] : f32 from vector<1x1x1xf32>
    %c0_4 = arith.constant 0 : index
    %c0_5 = arith.constant 0 : index
    %11 = memref.load %arg3[%c0_4, %c0_5] : memref<1x1xf32, #tpu.memory_space<smem>>
    memref.store %10, %arg3[%c0_4, %c0_5] : memref<1x1xf32, #tpu.memory_space<smem>>
    return
  }
  func.func @transform_0(%arg0: i32) -> (i32, i32) {
    %c0_i32 = arith.constant 0 : i32
    %c0_i32_0 = arith.constant 0 : i32
    return %arg0, %c0_i32 : i32, i32
  }
  func.func @transform_1(%arg0: i32) -> (i32, i32) {
    %c0_i32 = arith.constant 0 : i32
    %c0_i32_0 = arith.constant 0 : i32
    return %arg0, %c0_i32 : i32, i32
  }
  func.func @transform_2(%arg0: i32) -> (i32, i32) {
    %c0_i32 = arith.constant 0 : i32
    %c0_i32_0 = arith.constant 0 : i32
    return %arg0, %c0_i32 : i32, i32
  }
}

</mosaic_0001>

<bundles_post_ra>
// kernel: tpu_custom_call.1
= control target key start
LH: loop header
LB: loop body
LE: loop exit
PB: predicated region body
PF: predicated region fallthrough
CT: control target
= control target key end

     0   :  { %7 = vsyncpa [#allocation3], 0  ;;  %s157_s0 = inlined_call_operand.hbm [shape: f32[8,128], index: 0, kind: input, shape index: {}]   ;;  %s158_s1 = inlined_call_operand.hbm [shape: f32[8,128], index: 1, kind: input, shape index: {}]   ;;  %s159_s2 = inlined_call_operand.hbm [shape: f32[1,1], index: 2, kind: output, shape index: {}]  }
   0x1   :  { %8 = vsyncpa [#allocation6], 0 }
   0x2   :  { %9 = vsyncpa [#allocation4], 0  ;;  %s130_s9 = smov [#allocation2]   ;;  %s131_s11 = smov [#allocation5]  }
   0x3   :  { %s16_s10 = sshll.u32 %s130_s9, 4  ;;  %s26_s12 = sshll.u32 %s131_s11, 4  ;;  %s17_s10 = int_to_ptr.vmem [resolvable:$true] %s16_s10  ;;  %s27_s12 = int_to_ptr.vmem [resolvable:$true] %s26_s12 }
   0x4   :  { %s84_s13 = scalar_lea.vmem %s17_s10, 128  ;;  %p89_p1 = scmp.lt.s32.totalorder %s17_s10, %s17_s10 }
   0x5   :  { %p85_p0 = scmp.ne.s32.totalorder %s17_s10, %s84_s13  ;;  %p90_p2 = scmp.lt.s32.totalorder %s84_s13, %s84_s13 }
   0x7   :  { %p91_p3 = por %p90_p2, %p89_p1 }
   0x9   :  { %p92_p4 = pnand %p91_p3, %p85_p0 }
   0xb   :  { %95 = shalt.err (!%p92_p4)
}
   0xc   :  { %19 = dma.hbm_to_vmem [thread:$0]  %s157_s0, 128, %s17_s10, [#allocation3]  }
   0xd   :  { %s104_s16 = scalar_lea.vmem %s27_s12, 128  ;;  %p109_p6 = scmp.lt.s32.totalorder %s27_s12, %s27_s12 }
   0xe   :  { %p105_p5 = scmp.ne.s32.totalorder %s27_s12, %s104_s16  ;;  %p110_p7 = scmp.lt.s32.totalorder %s104_s16, %s104_s16 }
  0x10   :  { %p111_p8 = por %p110_p7, %p109_p6 }
  0x12   :  { %p112_p9 = pnand %p111_p8, %p105_p5 }
  0x14   :  { %115 = shalt.err (!%p112_p9)
}
  0x15   :  { %29 = dma.hbm_to_vmem [thread:$0]  %s158_s1, 128, %s27_s12, [#allocation6]  }
  0x16   :  { %124 = dma.done.wait [#allocation3], 128  }
  0x17   :  { %125 = vsyncadd [#allocation3], 4294967168 }
  0x18   :  { %126 = dma.done.wait [#allocation6], 128  }
  0x19   :  { %127 = vsyncadd [#allocation6], 4294967168  ;;  %v36_v0 = vld [vmem:[#allocation2] sm:$0xff]  ;;  %v37_v1 = vld [vmem:[#allocation5] sm:$0xff]  ;;  %s132_s1 = smov [#allocation7]  }
  0x1a   :  { %v38_v2 = vsub.f32 %v36_v0, %v37_v1 }
  0x1c   :  { %v39_v3 = vand.u32 2147483647, %v38_v2 }
  0x1e   :  { %v40_v4 = vmul.f32 0.5, %v39_v3 }
  0x20   :  { %v41_v5 = vmul.f32 1.442695, %v40_v4 }
  0x22   :  { %74 = vpow2.f32 %v41_v5 }
  0x2f   :  { %v75_v6 = vpop.eup %74 }
  0x30   :  { %43 = vadd.xlane.f32.xlu0 %v75_v6 }
  0xb9   :  { %v44_v7 = vpop.xlane.xlu0 %43 }
  0xba   :  { %v45_v8 = vrot.slane %v44_v7, 4 }
  0xbc   :  { %v46_v9 = vadd.f32 %v45_v8, %v44_v7 }
  0xbe   :  { %v47_v10 = vrot.slane %v46_v9, 2 }
  0xc0   :  { %v48_v11 = vadd.f32 %v47_v10, %v46_v9 }
  0xc2   :  { %v49_v12 = vrot.slane %v48_v11, 1 }
  0xc4   :  { %v50_v13 = vadd.f32 %v49_v12, %v48_v11 }
  0xc6   :  { %69 = vpush %v50_v13 }
  0xf7   :  { %s70_s0 = spop %69 }
  0xf8   :  { %53 = sst [smem:[#allocation7]] %s70_s0 }
  0xf9   :  { %61 = dma.smem_to_hbm %s132_s1, 16, %s159_s2, [#allocation4]  }
  0xfa   :  { %128 = dma.done.wait [#allocation4], 16  }
  0xfb   :  { %129 = vsyncadd [#allocation4], 4294967280 }
  0xfc   :  { %65 = sfence }
  0xfd   :  { %66 = vsyncpa [#allocation3], 1 }
  0xfe   :  { %67 = vsyncpa [#allocation6], 1 }
  0xff   :  { %68 = vsyncpa [#allocation4], 1 }

</bundles_post_ra>
